<compile_context>
chip_gen: v7x
topology: tpu7x:2x2x1
jax: 0.10.0
libtpu: 0.0.40
codegen_flags: <defaults>
</compile_context>

<pallas_src>
import jax
import jax.numpy as jnp
from jax.experimental import pallas as pl
from jax.experimental.pallas import tpu as pltpu


def _round_up(n, m):
    return ((n + m - 1) // m) * m


def _tile_bytes(rows, cols, itemsize):
    """Layout-aware VMEM footprint: last dim -> 128 lanes, 2nd-to-last -> 8/16/32 sublanes."""
    sublane = {4: 8, 2: 16, 1: 32}.get(int(itemsize), 8)
    return _round_up(max(int(rows), 1), sublane) * _round_up(max(int(cols), 1), 128) * int(itemsize)


def _vmem_capacity_bytes():
    try:
        info = pltpu.get_tpu_info()
        cap = getattr(info, "vmem_capacity_bytes", None)
        if cap:
            return int(cap)
    except Exception:
        pass
    return 64 << 20  # conservative default (v7x per-TC)


def _sigmoid_eup(h):
    # sigmoid(h) == 0.5 * tanh(0.5 * h) + 0.5 ; tanh lowers to the EUP (free slot here).
    return 0.5 * jnp.tanh(0.5 * h) + 0.5


def qnet_kernel(x_ref, w1_ref, b1_ref, w2_ref, b2_ref, w3_ref, b3_ref, o_ref):
    # Layer 1: Linear(I -> H) + Sigmoid.  LHS cast to weight dtype (bf16 MXU path when
    # params are bf16); accumulation is f32 via preferred_element_type.
    x = x_ref[...].astype(w1_ref.dtype)                                 # (TB, I)
    h = jnp.dot(x, w1_ref[...], preferred_element_type=jnp.float32) + b1_ref[...]
    h = _sigmoid_eup(h)

    # Layer 2: Linear(H -> H) + Sigmoid
    h = jnp.dot(h.astype(w2_ref.dtype), w2_ref[...],
                preferred_element_type=jnp.float32) + b2_ref[...]
    h = _sigmoid_eup(h)

    # Layer 3: Linear(H -> O)  (no nonlinearity)
    out = jnp.dot(h.astype(w3_ref.dtype), w3_ref[...],
                  preferred_element_type=jnp.float32) + b3_ref[...]
    o_ref[...] = out.astype(o_ref.dtype)                                # (TB, O)


def qnet_forward(x, params, *, block_b=2048, stream_dtype=None, out_dtype=jnp.float32):
    """Fused QNet forward.

    stream_dtype: optionally cast the streamed x tiles (e.g. jnp.bfloat16) to halve HBM
    traffic on this mem-bound kernel; accumulation inside the kernel stays f32.
    """
    w1, b1, w2, b2, w3, b3 = params
    if stream_dtype is not None and x.dtype != stream_dtype:
        x = x.astype(stream_dtype)

    B, I = x.shape
    H = w1.shape[1]
    O = w3.shape[1]

    x_item = jnp.dtype(x.dtype).itemsize
    w_item = jnp.dtype(w1.dtype).itemsize
    out_item = jnp.dtype(out_dtype).itemsize

    # --- Batch tile: large (amortize ~0.35us/step), multiple of 8 sublanes, and capped at
    # ~B/2 once B >= 16 so grid >= 2 and the "parallel" axis feeds both v7x TensorCores. ---
    B8 = _round_up(B, 8)
    TB = min(_round_up(block_b, 8), B8)
    if B8 >= 16:
        TB = min(TB, _round_up((B8 + 1) // 2, 8))
    TB = max(8, _round_up(TB, 8))

    # --- Generation-aware VMEM budget; shrink TB if the layout-aware estimate overflows. ---
    vmem_cap = _vmem_capacity_bytes()
    budget = max(vmem_cap - (8 << 20), 16 << 20)

    def estimate(tb):
        return (2 * _tile_bytes(tb, I, x_item)                 # streamed x tiles (dbl-buffered)
                + 2 * _tile_bytes(tb, O, out_item)             # streamed out tiles (dbl-buffered)
                + 2 * (_tile_bytes(I, H, w_item)               # resident weights; 2x because the
                       + _tile_bytes(H, H, w_item)             # default pipeline double-buffers
                       + _tile_bytes(H, O, w_item)             # even constant-index blocks
                       + 2 * _tile_bytes(1, H, w_item)
                       + _tile_bytes(1, O, w_item))
                + 3 * _tile_bytes(tb, H, 4)                    # f32 intermediates
                + _tile_bytes(tb, O, 4))

    while estimate(TB) > budget and TB > 8:
        TB = max(8, _round_up(TB // 2, 8))

    B_pad = _round_up(B, TB)
    if B_pad != B:
        x = jnp.pad(x, ((0, B_pad - B), (0, 0)))
    grid = (B_pad // TB,)

    vmem_limit = int(min(max(int(1.25 * estimate(TB)) + (4 << 20), 16 << 20), budget))

    cost = pl.CostEstimate(
        flops=2 * B_pad * (I * H + H * H + H * O),
        transcendentals=2 * B_pad * H,
        bytes_accessed=(B_pad * I * x_item + B_pad * O * out_item
                        + (I * H + H * H + H * O + 2 * H + O) * w_item),
    )

    out_padded = pl.pallas_call(
        qnet_kernel,
        out_shape=jax.ShapeDtypeStruct((B_pad, O), out_dtype),
        grid=grid,
        in_specs=[
            pl.BlockSpec((TB, I), lambda i: (i, 0)),      # x: streamed per batch tile
            pl.BlockSpec((I, H), lambda i: (0, 0)),       # w1: resident in VMEM
            pl.BlockSpec((1, H), lambda i: (0, 0)),       # b1
            pl.BlockSpec((H, H), lambda i: (0, 0)),       # w2
            pl.BlockSpec((1, H), lambda i: (0, 0)),       # b2
            pl.BlockSpec((H, O), lambda i: (0, 0)),       # w3 (no lane padding)
            pl.BlockSpec((1, O), lambda i: (0, 0)),       # b3
        ],
        # Real-O output block: full last dim is legal; masked vst is far cheaper than the
        # 32x HBM writeback inflation that 128-lane padding caused at O=4.
        out_specs=pl.BlockSpec((TB, O), lambda i: (i, 0)),
        compiler_params=pltpu.CompilerParams(
            dimension_semantics=("parallel",),            # batch tiles shard across v7x's 2 TCs
            vmem_limit_bytes=vmem_limit,
        ),
        cost_estimate=cost,
    )(x, w1, b1, w2, b2, w3, b3)

    return out_padded[:B, :O]


def init_params(key, input_size, hidden_size, output_size, dtype=jnp.float32):
    """Deterministic init mimicking nn.Linear's uniform(-1/sqrt(fan_in), 1/sqrt(fan_in)).

    dtype=jnp.bfloat16 halves resident-weight bytes and (with stream_dtype=bf16) halves the
    streamed x traffic; accumulation in the kernel stays f32.  Expect ~1e-2-level error vs.
    an f32 reference in that mode (use a looser tolerance).
    """
    ks = jax.random.split(key, 6)

    def linear(kw, kb, fan_in, fan_out):
        bound = 1.0 / jnp.sqrt(fan_in)
        # stored as (in, out) so the kernel does x @ W
        w = jax.random.uniform(kw, (fan_in, fan_out), jnp.float32, -bound, bound)
        b = jax.random.uniform(kb, (1, fan_out), jnp.float32, -bound, bound)
        return w.astype(dtype), b.astype(dtype)

    w1, b1 = linear(ks[0], ks[1], input_size, hidden_size)
    w2, b2 = linear(ks[2], ks[3], hidden_size, hidden_size)
    w3, b3 = linear(ks[4], ks[5], hidden_size, output_size)
    return (w1, b1, w2, b2, w3, b3)


def qnet_reference(x, params):
    w1, b1, w2, b2, w3, b3 = params
    f32 = lambda a: a.astype(jnp.float32)
    h = jax.nn.sigmoid(f32(x) @ f32(w1) + f32(b1))
    h = jax.nn.sigmoid(h @ f32(w2) + f32(b2))
    return h @ f32(w3) + f32(b3)


if __name__ == "__main__":
    B, INPUT, HIDDEN, OUTPUT = 8, 16, 32, 4

    key = jax.random.PRNGKey(0)
    kx, kp = jax.random.split(key)
    x = jax.random.normal(kx, (B, INPUT), dtype=jnp.float32)
    params = init_params(kp, INPUT, HIDDEN, OUTPUT)

    # f32 path: tight check.
    out = qnet_forward(x, params)
    jax.block_until_ready(out)
    ref = qnet_reference(x, params)
    assert out.shape == (B, OUTPUT)
    assert jnp.allclose(out, ref, atol=1e-5, rtol=1e-5)

    # Batch not a multiple of the sublane tile (exercises padding + grid >= 2 for megacore).
    x2 = jax.random.normal(jax.random.PRNGKey(1), (B + 2, INPUT), dtype=jnp.float32)
    out2 = qnet_forward(x2, params)
    jax.block_until_ready(out2)
    ref2 = qnet_reference(x2, params)
    assert out2.shape == (B + 2, OUTPUT)
    assert jnp.allclose(out2, ref2, atol=1e-5, rtol=1e-5)

    # bf16 weights + bf16-streamed x (halved HBM traffic); looser, documented tolerance.
    params_bf16 = init_params(kp, INPUT, HIDDEN, OUTPUT, dtype=jnp.bfloat16)
    out3 = qnet_forward(x, params_bf16, stream_dtype=jnp.bfloat16)
    jax.block_until_ready(out3)
    ref3 = qnet_reference(x.astype(jnp.bfloat16), params_bf16)
    assert out3.shape == (B, OUTPUT)
    assert jnp.allclose(out3, ref3, atol=1e-1, rtol=1e-1)

    print("KERNEL_OK")
</pallas_src>

<mosaic_0001>
module attributes {stable_mosaic.version = 11 : i64} {
  func.func @qnet_kernel(%arg0: i32, %arg1: memref<8x16xf32, #tpu.memory_space<vmem>>, %arg2: memref<16x32xf32, #tpu.memory_space<vmem>>, %arg3: memref<1x32xf32, #tpu.memory_space<vmem>>, %arg4: memref<32x32xf32, #tpu.memory_space<vmem>>, %arg5: memref<1x32xf32, #tpu.memory_space<vmem>>, %arg6: memref<32x4xf32, #tpu.memory_space<vmem>>, %arg7: memref<1x4xf32, #tpu.memory_space<vmem>>, %arg8: memref<8x4xf32, #tpu.memory_space<vmem>>) attributes {dimension_semantics = [#tpu.dimension_semantics<parallel>], iteration_bounds = array<i64: 1>, scalar_prefetch = 0 : i64, scratch_operands = 0 : i64, tpu.core_type = #tpu.core_type<tc>, window_params = [{transform_indices = @transform_0, window_bounds = array<i64: 8, 16>}, {pipeline_mode = #tpu.pipeline_mode<synchronous>, transform_indices = @transform_1, window_bounds = array<i64: 16, 32>}, {pipeline_mode = #tpu.pipeline_mode<synchronous>, transform_indices = @transform_2, window_bounds = array<i64: 1, 32>}, {pipeline_mode = #tpu.pipeline_mode<synchronous>, transform_indices = @transform_3, window_bounds = array<i64: 32, 32>}, {pipeline_mode = #tpu.pipeline_mode<synchronous>, transform_indices = @transform_4, window_bounds = array<i64: 1, 32>}, {pipeline_mode = #tpu.pipeline_mode<synchronous>, transform_indices = @transform_5, window_bounds = array<i64: 32, 4>}, {pipeline_mode = #tpu.pipeline_mode<synchronous>, transform_indices = @transform_6, window_bounds = array<i64: 1, 4>}, {transform_indices = @transform_7, window_bounds = array<i64: 8, 4>}]} {
    %c0 = arith.constant 0 : index
    %c0_0 = arith.constant 0 : index
    %0 = vector.load %arg1[%c0, %c0_0] : memref<8x16xf32, #tpu.memory_space<vmem>>, vector<8x16xf32>
    %c0_1 = arith.constant 0 : index
    %c0_2 = arith.constant 0 : index
    %1 = vector.load %arg2[%c0_1, %c0_2] : memref<16x32xf32, #tpu.memory_space<vmem>>, vector<16x32xf32>
    %cst = arith.constant dense<0.000000e+00> : vector<8x32xf32>
    %2 = tpu.matmul %0, %1, %cst {dimension_numbers = #tpu.dot_dimension_numbers<[1], [0], [0], [1], [0, 0, 1, 1], [], []>} : vector<8x16xf32>, vector<16x32xf32>, vector<8x32xf32> -> vector<8x32xf32>
    %c0_3 = arith.constant 0 : index
    %c0_4 = arith.constant 0 : index
    %3 = vector.load %arg3[%c0_3, %c0_4] : memref<1x32xf32, #tpu.memory_space<vmem>>, vector<1x32xf32>
    %4 = vector.broadcast %3 : vector<1x32xf32> to vector<8x32xf32>
    %5 = arith.addf %2, %4 : vector<8x32xf32>
    %cst_5 = arith.constant 5.000000e-01 : f32
    %6 = vector.broadcast %cst_5 : f32 to vector<8x32xf32>
    %7 = arith.mulf %6, %5 : vector<8x32xf32>
    %8 = math.tanh %7 : vector<8x32xf32>
    %cst_6 = arith.constant 5.000000e-01 : f32
    %9 = vector.broadcast %cst_6 : f32 to vector<8x32xf32>
    %10 = arith.mulf %9, %8 : vector<8x32xf32>
    %cst_7 = arith.constant 5.000000e-01 : f32
    %11 = vector.broadcast %cst_7 : f32 to vector<8x32xf32>
    %12 = arith.addf %10, %11 : vector<8x32xf32>
    %c0_8 = arith.constant 0 : index
    %c0_9 = arith.constant 0 : index
    %13 = vector.load %arg4[%c0_8, %c0_9] : memref<32x32xf32, #tpu.memory_space<vmem>>, vector<32x32xf32>
    %cst_10 = arith.constant dense<0.000000e+00> : vector<8x32xf32>
    %14 = tpu.matmul %12, %13, %cst_10 {dimension_numbers = #tpu.dot_dimension_numbers<[1], [0], [0], [1], [0, 0, 1, 1], [], []>} : vector<8x32xf32>, vector<32x32xf32>, vector<8x32xf32> -> vector<8x32xf32>
    %c0_11 = arith.constant 0 : index
    %c0_12 = arith.constant 0 : index
    %15 = vector.load %arg5[%c0_11, %c0_12] : memref<1x32xf32, #tpu.memory_space<vmem>>, vector<1x32xf32>
    %16 = vector.broadcast %15 : vector<1x32xf32> to vector<8x32xf32>
    %17 = arith.addf %14, %16 : vector<8x32xf32>
    %cst_13 = arith.constant 5.000000e-01 : f32
    %18 = vector.broadcast %cst_13 : f32 to vector<8x32xf32>
    %19 = arith.mulf %18, %17 : vector<8x32xf32>
    %20 = math.tanh %19 : vector<8x32xf32>
    %cst_14 = arith.constant 5.000000e-01 : f32
    %21 = vector.broadcast %cst_14 : f32 to vector<8x32xf32>
    %22 = arith.mulf %21, %20 : vector<8x32xf32>
    %cst_15 = arith.constant 5.000000e-01 : f32
    %23 = vector.broadcast %cst_15 : f32 to vector<8x32xf32>
    %24 = arith.addf %22, %23 : vector<8x32xf32>
    %c0_16 = arith.constant 0 : index
    %c0_17 = arith.constant 0 : index
    %25 = vector.load %arg6[%c0_16, %c0_17] : memref<32x4xf32, #tpu.memory_space<vmem>>, vector<32x4xf32>
    %cst_18 = arith.constant dense<0.000000e+00> : vector<8x4xf32>
    %26 = tpu.matmul %24, %25, %cst_18 {dimension_numbers = #tpu.dot_dimension_numbers<[1], [0], [0], [1], [0, 0, 1, 1], [], []>} : vector<8x32xf32>, vector<32x4xf32>, vector<8x4xf32> -> vector<8x4xf32>
    %c0_19 = arith.constant 0 : index
    %c0_20 = arith.constant 0 : index
    %27 = vector.load %arg7[%c0_19, %c0_20] : memref<1x4xf32, #tpu.memory_space<vmem>>, vector<1x4xf32>
    %28 = vector.broadcast %27 : vector<1x4xf32> to vector<8x4xf32>
    %29 = arith.addf %26, %28 : vector<8x4xf32>
    %c0_21 = arith.constant 0 : index
    %c0_22 = arith.constant 0 : index
    %30 = vector.load %arg8[%c0_21, %c0_22] : memref<8x4xf32, #tpu.memory_space<vmem>>, vector<8x4xf32>
    tpu.vector_store %arg8[%c0_21, %c0_22], %29 {strides = array<i32>} : memref<8x4xf32, #tpu.memory_space<vmem>>, vector<8x4xf32>,
    return
  }
  func.func @transform_0(%arg0: i32) -> (i32, i32) {
    %c0_i32 = arith.constant 0 : i32
    %c0_i32_0 = arith.constant 0 : i32
    return %arg0, %c0_i32 : i32, i32
  }
  func.func @transform_1(%arg0: i32) -> (i32, i32) {
    %c0_i32 = arith.constant 0 : i32
    %c0_i32_0 = arith.constant 0 : i32
    %c0_i32_1 = arith.constant 0 : i32
    return %c0_i32, %c0_i32_0 : i32, i32
  }
  func.func @transform_2(%arg0: i32) -> (i32, i32) {
    %c0_i32 = arith.constant 0 : i32
    %c0_i32_0 = arith.constant 0 : i32
    %c0_i32_1 = arith.constant 0 : i32
    return %c0_i32, %c0_i32_0 : i32, i32
  }
  func.func @transform_3(%arg0: i32) -> (i32, i32) {
    %c0_i32 = arith.constant 0 : i32
    %c0_i32_0 = arith.constant 0 : i32
    %c0_i32_1 = arith.constant 0 : i32
    return %c0_i32, %c0_i32_0 : i32, i32
  }
  func.func @transform_4(%arg0: i32) -> (i32, i32) {
    %c0_i32 = arith.constant 0 : i32
    %c0_i32_0 = arith.constant 0 : i32
    %c0_i32_1 = arith.constant 0 : i32
    return %c0_i32, %c0_i32_0 : i32, i32
  }
  func.func @transform_5(%arg0: i32) -> (i32, i32) {
    %c0_i32 = arith.constant 0 : i32
    %c0_i32_0 = arith.constant 0 : i32
    %c0_i32_1 = arith.constant 0 : i32
    return %c0_i32, %c0_i32_0 : i32, i32
  }
  func.func @transform_6(%arg0: i32) -> (i32, i32) {
    %c0_i32 = arith.constant 0 : i32
    %c0_i32_0 = arith.constant 0 : i32
    %c0_i32_1 = arith.constant 0 : i32
    return %c0_i32, %c0_i32_0 : i32, i32
  }
  func.func @transform_7(%arg0: i32) -> (i32, i32) {
    %c0_i32 = arith.constant 0 : i32
    %c0_i32_0 = arith.constant 0 : i32
    return %arg0, %c0_i32 : i32, i32
  }
}

</mosaic_0001>

<bundles_post_ra>
// kernel: tpu_custom_call.1
= control target key start
LH: loop header
LB: loop body
LE: loop exit
PB: predicated region body
PF: predicated region fallthrough
CT: control target
= control target key end

     0   :  { %12 = vsyncpa [#allocation3], 0  ;;  %s405_s24 = smov [#allocation2]   ;;  %s504_s0 = inlined_call_operand.vmem [shape: f32[8,16], index: 0, kind: input, shape index: {}]   ;;  %s505_s1 = inlined_call_operand.hbm [shape: f32[16,32], index: 1, kind: input, shape index: {}]   ;;  %s506_s2 = inlined_call_operand.vmem [shape: f32[1,32], index: 2, kind: input, shape index: {}]   ;;  %s507_s3 = inlined_call_operand.vmem [shape: f32[32,32], index: 3, kind: input, shape index: {}]   ;;  %s508_s4 = inlined_call_operand.vmem [shape: f32[1,32], index: 4, kind: input, shape index: {}]   ;;  %s509_s5 = inlined_call_operand.vmem [shape: f32[32,4], index: 5, kind: input, shape index: {}]   ;;  %s510_s6 = inlined_call_operand.vmem [shape: f32[1,4], index: 6, kind: input, shape index: {}]   ;;  %s511_s7 = inlined_call_operand.vmem [shape: f32[8,4], index: 7, kind: output, shape index: {}]  }
   0x1   :  { %s20_s25 = sshll.u32 %s405_s24, 4  ;;  %s381_s28 = scalar_lea.hbm %s505_s1, 256  ;;  %s21_s25 = int_to_ptr.vmem [resolvable:$true] %s20_s25 }
   0x2   :  { %p382_p0 = scmp.ne.s32.totalorder %s505_s1, %s381_s28  ;;  %p385_p1 = scmp.lt.u32.totalorder %s381_s28, %s505_s1 }
   0x4   :  { %p387_p2 = pnand %p385_p1, %p382_p0 }
   0x6   :  { %390 = shalt.err (!%p387_p2)
}
   0x7   :  { %s391_s10 = scalar_lea.vmem %s21_s25, 256  ;;  %p396_p4 = scmp.lt.s32.totalorder %s21_s25, %s21_s25 }
   0x8   :  { %p392_p3 = scmp.ne.s32.totalorder %s21_s25, %s391_s10  ;;  %p397_p5 = scmp.lt.s32.totalorder %s391_s10, %s391_s10 }
   0xa   :  { %p398_p6 = por %p397_p5, %p396_p4 }
   0xc   :  { %p399_p7 = pnand %p398_p6, %p392_p3 }
   0xe   :  { %402 = shalt.err (!%p399_p7)
}
   0xf   :  { %s406_s11 = smov 128   ;;  %s407_s12 = smov 8  }
  0x10   :  { %26 = dma.hbm_to_vmem [thread:$0]  %s505_s1, 256, %s21_s25, [#allocation3], %s406_s11, %s406_s11, %s407_s12  }
  0x11   :  { %403 = dma.done.wait [#allocation3], 256  }
  0x12   :  { %404 = vsyncadd [#allocation3], 4294967040  ;;  %v408_v0 = vmov 0.0|0.0   ;;  %vm409_vm0 = vmmov 0   ;;  %v410_v1 = vmov 0.0   ;;  %v41_v2 = vld [vmem:[#allocation2] sm:$0xff] }
  0x13   :  { %356 = vmatprep.subr.bf16.mxu0 %v408_v0  ;;  %331 = vmatprep.mubr.msk.f32.mxu0 %vm409_vm0, %v410_v1  ;;  %v42_v3 = vld [vmem:[#allocation2 + $0x8] sm:$0xff]  ;;  %v40_v5 = vld [vmem:[%s504_s0] sm:$0xff]  ;;  %vm50_vm1 = vcmask 130048   ;;  %v130_v9 = vld [vmem:[%s507_s3 + $0x10] sm:$0xff]  ;;  %vm139_vm2 = vcmask 261120   ;;  %vm301_vm3 = vcmask 31744  }
  0x14   :  { %359 = vmatprep.subr.bf16.mxu1 %v408_v0  ;;  %342 = vmatprep.mubr.msk.f32.mxu1 %vm409_vm0, %v410_v1  ;;  %v357_v4 = vpack.c.bf16 %v42_v3, %v41_v2  ;;  %v128_v6 = vld [vmem:[%s507_s3] sm:$0xff]  ;;  %v129_v7 = vld [vmem:[%s507_s3 + $0x8] sm:$0xff]  ;;  %v131_v10 = vld [vmem:[%s507_s3 + $0x18] sm:$0xff] }
  0x15   :  { %v360_v8 = vpack.c.bf16 %v129_v7, %v128_v6  ;;  %v363_v11 = vpack.c.bf16 %v131_v10, %v130_v9  ;;  %v308_v12 = vld [vmem:[%s506_s2] ss:$0 sm:$0xff]  ;;  %v218_v21 = vld [vmem:[%s509_s5 + $0x8] sm:$0xff]  ;;  %v219_v23 = vld [vmem:[%s509_s5 + $0x10] sm:$0xff] }
  0x16   :  { %358 = vmatpush3.bf16.msra.mxu0 %v357_v4  ;;  %v217_v20 = vld [vmem:[%s509_s5] sm:$0xff]  ;;  %v220_v24 = vld [vmem:[%s509_s5 + $0x18] sm:$0xff] }
  0x17   :  { %365 = vmatprep.subr.bf16.mxu0 %v408_v0  ;;  %361 = vmatpush3.bf16.msra.mxu1 %v360_v8  ;;  %v366_v22 = vpack.c.bf16 %v218_v21, %v217_v20  ;;  %v369_v25 = vpack.c.bf16 %v220_v24, %v219_v23  ;;  %v310_v26 = vld [vmem:[%s508_s4] ss:$0 sm:$0xff] }
  0x18   :  { %362 = vmatprep.subr.bf16.mxu1 %v408_v0  ;;  %v312_v34 = vld [vmem:[%s510_s6] ss:$0 sm:$0xff] }
  0x19   :  { %332 = vmatmul.mubr.msk.f32.vlgmr.msra.gmra.mrb[0].mxu0 %vm50_vm1, %v40_v5 }
  0x1a   :  { %353 = vmatprep.mubr.msk.f32.mxu0 %vm409_vm0, %v410_v1  ;;  %367 = vmatpush3.bf16.msra.mxu0 %v366_v22 }
  0x1b   :  { %364 = vmatpush3.bf16.msra.mxu1 %v363_v11  ;;  %368 = vmatprep.subr.bf16.mxu0 %v408_v0 }
  0x1e   :  { %370 = vmatpush3.bf16.msra.mxu0 %v369_v25 }
  0xec   :  { %v120_v13 = vpop.f32.mrb[0].mxu0 }
  0xed   :  { %v121_v14 = vadd.f32 %v308_v12, %v120_v13  ;;  %v333_v15 = vpop.f32.mrb[1].mxu0 }
  0xef   :  { %v124_v16 = vmul.f32 0.5, %v121_v14 }
  0xf1   :  { %377 = vtanh.f32 %v124_v16 }
  0xfb   :  { %v378_v17 = vpop.eup %377 }
  0xfc   :  { %v126_v18 = vmul.f32 0.5, %v378_v17 }
  0xfe   :  { %v127_v19 = vadd.f32 0.5, %v126_v18 }
 0x100   :  { %343 = vmatmul.mubr.msk.f32.vlgmr.msra.gmra.mrb[0].mxu1 %vm139_vm2, %v127_v19 }
 0x1d3   :  { %v209_v27 = vpop.f32.mrb[0].mxu1 }
 0x1d4   :  { %v210_v28 = vadd.f32 %v310_v26, %v209_v27  ;;  %v344_v29 = vpop.f32.mrb[1].mxu1 }
 0x1d6   :  { %v213_v30 = vmul.f32 0.5, %v210_v28 }
 0x1d8   :  { %379 = vtanh.f32 %v213_v30 }
 0x1e2   :  { %v380_v31 = vpop.eup %379 }
 0x1e3   :  { %v215_v32 = vmul.f32 0.5, %v380_v31 }
 0x1e5   :  { %v216_v33 = vadd.f32 0.5, %v215_v32 }
 0x1e7   :  { %354 = vmatmul.mubr.msk.f32.vlgmr.msra.gmra.mrb[2].mxu0 %vm139_vm2, %v216_v33 }
 0x2ba   :  { %v297_v35 = vpop.f32.mrb[2].mxu0 }
 0x2bb   :  { %v298_v36 = vadd.f32 %v312_v34, %v297_v35  ;;  %v355_v37 = vpop.f32.mrb[3].mxu0 }
 0x2bd   :  { %302 = vst.msk [vmem:[%s511_s7] sm:$0xff] %vm301_vm3, %v298_v36 }
 0x2be   :  { %307 = vsyncpa [#allocation3], 1 }

</bundles_post_ra>
